<compile_context>
chip_gen: v6e
topology: v6e:2x2x1
jax: 0.10.0
libtpu: 0.0.40
codegen_flags: <defaults>
</compile_context>

<pallas_src>
import functools

import jax
import jax.numpy as jnp
import numpy as np
from jax.experimental import pallas as pl
from jax.experimental.pallas import tpu as pltpu


# ---------------------------------------------------------------------------
# helpers
# ---------------------------------------------------------------------------

def _round_up(x: int, m: int) -> int:
    return ((x + m - 1) // m) * m


def _round_down(x: int, m: int) -> int:
    return max(m, (x // m) * m)


def _sublane_pack(dtype) -> int:
    # rows per packed vreg: 8 for 32-bit, 16 for 16-bit, 32 for 8-bit dtypes
    return max(8, 32 // jnp.dtype(dtype).itemsize)


def _vmem_capacity_bytes() -> int:
    try:
        cap = getattr(pltpu.get_tpu_info(), "vmem_capacity_bytes", None)
        if cap:
            return int(cap)
    except Exception:
        pass
    return 64 * 1024 * 1024  # conservative default (v7x-sized VMEM)


# ---------------------------------------------------------------------------
# kernels
# ---------------------------------------------------------------------------

def _fused_kernel(params_ref, x_ref, o_ref, *, brightness_first: bool):
    # params (SMEM f32[4]): [1 - b, b * target, 1 - c, c / cols]
    one_minus_b = params_ref[0]
    b_times_t = params_ref[1]
    one_minus_c = params_ref[2]
    c_over_cols = params_ref[3]

    x = x_ref[...].astype(jnp.float32)

    def bright(v):
        return jnp.clip(one_minus_b * v + b_times_t, 0.0, 255.0)

    def contr(v):
        s = jnp.sum(v, axis=-1, keepdims=True)          # per-row sum over full D*H*W
        return jnp.clip(one_minus_c * v + c_over_cols * s, 0.0, 255.0)

    y = contr(bright(x)) if brightness_first else bright(contr(x))
    o_ref[...] = y.astype(o_ref.dtype)


def _reduce_kernel(params_ref, x_ref, sum_ref, *, brightness_first: bool,
                   true_cols: int, col_tile: int):
    # Pass 1 of the column-tiled path: accumulate per-row sums across column tiles.
    j = pl.program_id(1)

    @pl.when(j == 0)
    def _():
        sum_ref[...] = jnp.zeros_like(sum_ref)

    x = x_ref[...].astype(jnp.float32)
    if brightness_first:
        # contrast mean is taken over the brightness-adjusted image
        x = jnp.clip(params_ref[0] * x + params_ref[1], 0.0, 255.0)

    if true_cols % col_tile != 0:
        # boundary blocks contain unspecified data past the real columns; mask it out
        gcol = j * col_tile + jax.lax.broadcasted_iota(jnp.int32, (1, col_tile), 1)
        x = jnp.where(gcol < true_cols, x, 0.0)

    sum_ref[...] += jnp.sum(x, axis=-1, keepdims=True)


def _apply_kernel(params_ref, x_ref, sum_ref, o_ref, *, brightness_first: bool):
    # Pass 2 of the column-tiled path: apply blends with the precomputed per-row mean.
    one_minus_b = params_ref[0]
    b_times_t = params_ref[1]
    one_minus_c = params_ref[2]
    c_over_cols = params_ref[3]

    x = x_ref[...].astype(jnp.float32)
    c_mean = sum_ref[...] * c_over_cols                  # (tile_rows, 1): contrast * mean

    def bright(v):
        return jnp.clip(one_minus_b * v + b_times_t, 0.0, 255.0)

    def contr(v):
        return jnp.clip(one_minus_c * v + c_mean, 0.0, 255.0)

    y = contr(bright(x)) if brightness_first else bright(contr(x))
    o_ref[...] = y.astype(o_ref.dtype)


# ---------------------------------------------------------------------------
# wrapper
# ---------------------------------------------------------------------------

def color_jitter_3d(img, *, brightness=0.5, contrast=0.5, seed=0,
                    block_budget_bytes=None):
    """Forward pass of ColorJitter3D(brightness, contrast) on a [B, C, D, H, W] volume."""
    # ---- host-side RNG (mirrors torch.randperm / uniform_ / torch.rand; no device sync) ----
    rng = np.random.RandomState(seed)
    brightness_first = bool(rng.permutation(2)[0] == 0)
    b_factor = float(rng.uniform(0.0, brightness))
    c_factor = float(rng.uniform(0.0, contrast))
    target = 0.0 if float(rng.uniform()) < 0.5 else 255.0

    B, C, D, H, W = img.shape
    rows, cols = B * C, D * H * W
    x2 = img.reshape(rows, cols)                         # contiguous merge -> free reshape

    # runtime SMEM scalars -> no recompilation across random draws
    params = jnp.array(
        [1.0 - b_factor, b_factor * target, 1.0 - c_factor, c_factor / cols],
        dtype=jnp.float32)

    # ---- per-generation tile sizing against VMEM ----
    itemsize = jnp.dtype(img.dtype).itemsize
    pack = _sublane_pack(img.dtype)
    capacity = _vmem_capacity_bytes()
    vmem_limit = int(capacity * 0.75)          # raise the default 16/32 MiB scoped limit
    budget = int(capacity * 0.55) if block_budget_bytes is None else int(block_budget_bytes)
    per_elem = 4 * itemsize + 12               # 2x double-buffered in+out + f32 working headroom

    rows_a = _round_up(rows, pack)
    compiler = functools.partial(pltpu.CompilerParams, vmem_limit_bytes=vmem_limit)
    smem_spec = pl.BlockSpec(memory_space=pltpu.MemorySpace.SMEM)

    if pack * cols * per_elem <= budget:
        # ---------------- fused single pass (full row per block) ----------------
        tile_rows = _round_down(min(budget // (cols * per_elem), rows_a), pack)
        if rows_a >= 2 * pack:                  # keep >=2 grid steps so both v7x TCs get work
            tile_rows = min(tile_rows, _round_down(rows_a // 2, pack))

        out2 = pl.pallas_call(
            functools.partial(_fused_kernel, brightness_first=brightness_first),
            out_shape=jax.ShapeDtypeStruct((rows, cols), img.dtype),
            grid=(pl.cdiv(rows, tile_rows),),
            in_specs=[
                smem_spec,                                               # scalar params
                pl.BlockSpec((tile_rows, cols), lambda i: (i, 0)),       # image rows
            ],
            out_specs=pl.BlockSpec((tile_rows, cols), lambda i: (i, 0)),
            compiler_params=compiler(dimension_semantics=("parallel",)),
        )(params, x2)
    else:
        # ---------------- tiled two-pass (large D*H*W) ----------------
        tile_rows = min(rows_a, 512)
        if rows_a >= 2 * pack:
            tile_rows = min(tile_rows, _round_down(rows_a // 2, pack))
        col_tile = budget // (tile_rows * per_elem)
        if col_tile < 128:
            tile_rows = max(pack, _round_down(budget // (128 * per_elem), pack))
            col_tile = 128
        else:
            col_tile = _round_down(col_tile, 128)
        col_tile = min(col_tile, _round_up(cols, 128))

        grid = (pl.cdiv(rows, tile_rows), pl.cdiv(cols, col_tile))

        # pass 1: per-row sums (of the brightness-adjusted image when brightness runs first)
        sums = pl.pallas_call(
            functools.partial(_reduce_kernel, brightness_first=brightness_first,
                              true_cols=cols, col_tile=col_tile),
            out_shape=jax.ShapeDtypeStruct((rows, 1), jnp.float32),
            grid=grid,
            in_specs=[
                smem_spec,
                pl.BlockSpec((tile_rows, col_tile), lambda i, j: (i, j)),
            ],
            out_specs=pl.BlockSpec((tile_rows, 1), lambda i, j: (i, 0)),
            compiler_params=compiler(dimension_semantics=("parallel", "arbitrary")),
        )(params, x2)

        # pass 2: apply brightness/contrast blends with the per-row mean
        out2 = pl.pallas_call(
            functools.partial(_apply_kernel, brightness_first=brightness_first),
            out_shape=jax.ShapeDtypeStruct((rows, cols), img.dtype),
            grid=grid,
            in_specs=[
                smem_spec,
                pl.BlockSpec((tile_rows, col_tile), lambda i, j: (i, j)),
                pl.BlockSpec((tile_rows, 1), lambda i, j: (i, 0)),
            ],
            out_specs=pl.BlockSpec((tile_rows, col_tile), lambda i, j: (i, j)),
            compiler_params=compiler(dimension_semantics=("parallel", "parallel")),
        )(params, x2, sums)

    return out2.reshape(B, C, D, H, W), (brightness_first, b_factor, c_factor, target)


# ---------------------------------------------------------------------------
# pure-JAX reference mirroring the PyTorch code path
# ---------------------------------------------------------------------------

def _reference(img, brightness_first, b_factor, c_factor, target):
    x = img.astype(jnp.float32)

    def bright(v):
        return jnp.clip((1.0 - b_factor) * v + b_factor * target, 0.0, 255.0)

    def contr(v):
        m = jnp.mean(v, axis=(-3, -2, -1), keepdims=True)
        return jnp.clip((1.0 - c_factor) * v + c_factor * m, 0.0, 255.0)

    y = contr(bright(x)) if brightness_first else bright(contr(x))
    return y.astype(img.dtype)


if __name__ == "__main__":
    root = jax.random.PRNGKey(0)
    keys = jax.random.split(root, 4)

    def run_case(k, shape, seed, **kwargs):
        x = jax.random.uniform(k, shape, dtype=jnp.float32) * 255.0
        out, (bf, b_f, c_f, tgt) = color_jitter_3d(
            x, brightness=0.5, contrast=0.5, seed=seed, **kwargs)
        out = jax.block_until_ready(out)
        ref = _reference(x, bf, b_f, c_f, tgt)
        assert out.shape == x.shape and out.dtype == x.dtype
        assert jnp.allclose(out, ref, atol=1e-3, rtol=1e-5), f"mismatch for {shape}"

    # fused single pass, B*C = 6 (not a multiple of 8 -> ragged boundary row block)
    run_case(keys[0], (2, 3, 4, 8, 16), seed=0)
    # fused single pass with 2 row tiles (row tiling / megacore split)
    run_case(keys[1], (4, 4, 4, 8, 16), seed=1)
    # column-tiled two-pass path (forced via a tiny block budget), cols divisible by col_tile
    run_case(keys[2], (2, 4, 8, 16, 16), seed=2, block_budget_bytes=64 * 1024)
    # column-tiled two-pass with ragged columns + masked reduction (cols = 480)
    run_case(keys[3], (2, 4, 4, 8, 15), seed=3, block_budget_bytes=64 * 1024)

    print("KERNEL_OK")
</pallas_src>

<mosaic_0001>
module attributes {stable_mosaic.version = 11 : i64} {
  func.func @_fused_kernel(%arg0: i32, %arg1: memref<4xf32, #tpu.memory_space<smem>>, %arg2: memref<8x512xf32, #tpu.memory_space<vmem>>, %arg3: memref<8x512xf32, #tpu.memory_space<vmem>>) attributes {dimension_semantics = [#tpu.dimension_semantics<parallel>], iteration_bounds = array<i64: 1>, scalar_prefetch = 0 : i64, scratch_operands = 0 : i64, tpu.core_type = #tpu.core_type<tc>, window_params = [{transform_indices = @transform_0, window_bounds = array<i64: 4>}, {transform_indices = @transform_1, window_bounds = array<i64: 8, 512>}, {transform_indices = @transform_2, window_bounds = array<i64: 8, 512>}]} {
    %c0 = arith.constant 0 : index
    %0 = memref.load %arg1[%c0] : memref<4xf32, #tpu.memory_space<smem>>
    %c1 = arith.constant 1 : index
    %1 = memref.load %arg1[%c1] : memref<4xf32, #tpu.memory_space<smem>>
    %c2 = arith.constant 2 : index
    %2 = memref.load %arg1[%c2] : memref<4xf32, #tpu.memory_space<smem>>
    %c3 = arith.constant 3 : index
    %3 = memref.load %arg1[%c3] : memref<4xf32, #tpu.memory_space<smem>>
    %c0_0 = arith.constant 0 : index
    %c0_1 = arith.constant 0 : index
    %4 = vector.load %arg2[%c0_0, %c0_1] : memref<8x512xf32, #tpu.memory_space<vmem>>, vector<8x512xf32>
    %cst = arith.constant dense<0.000000e+00> : vector<8xf32>
    %5 = vector.multi_reduction <add>, %4, %cst [1] : vector<8x512xf32> to vector<8xf32>
    %6 = vector.shape_cast %5 : vector<8xf32> to vector<8x1xf32>
    %7 = vector.broadcast %2 : f32 to vector<8x512xf32>
    %8 = arith.mulf %7, %4 : vector<8x512xf32>
    %9 = vector.broadcast %3 : f32 to vector<8x1xf32>
    %10 = arith.mulf %9, %6 : vector<8x1xf32>
    %11 = vector.broadcast %10 : vector<8x1xf32> to vector<8x512xf32>
    %12 = arith.addf %8, %11 : vector<8x512xf32>
    %cst_2 = arith.constant 0.000000e+00 : f32
    %cst_3 = arith.constant 2.550000e+02 : f32
    %13 = vector.broadcast %cst_2 : f32 to vector<8x512xf32>
    %14 = arith.maximumf %13, %12 : vector<8x512xf32>
    %15 = vector.broadcast %cst_3 : f32 to vector<8x512xf32>
    %16 = arith.minimumf %15, %14 : vector<8x512xf32>
    %17 = vector.broadcast %0 : f32 to vector<8x512xf32>
    %18 = arith.mulf %17, %16 : vector<8x512xf32>
    %19 = vector.broadcast %1 : f32 to vector<8x512xf32>
    %20 = arith.addf %18, %19 : vector<8x512xf32>
    %cst_4 = arith.constant 0.000000e+00 : f32
    %cst_5 = arith.constant 2.550000e+02 : f32
    %21 = vector.broadcast %cst_4 : f32 to vector<8x512xf32>
    %22 = arith.maximumf %21, %20 : vector<8x512xf32>
    %23 = vector.broadcast %cst_5 : f32 to vector<8x512xf32>
    %24 = arith.minimumf %23, %22 : vector<8x512xf32>
    %c0_6 = arith.constant 0 : index
    %c0_7 = arith.constant 0 : index
    %25 = vector.load %arg3[%c0_6, %c0_7] : memref<8x512xf32, #tpu.memory_space<vmem>>, vector<8x512xf32>
    tpu.vector_store %arg3[%c0_6, %c0_7], %24 {strides = array<i32>} : memref<8x512xf32, #tpu.memory_space<vmem>>, vector<8x512xf32>,
    return
  }
  func.func @transform_0(%arg0: i32) -> i32 {
    %c0_i32 = arith.constant 0 : i32
    %c0_i32_0 = arith.constant 0 : i32
    return %c0_i32 : i32
  }
  func.func @transform_1(%arg0: i32) -> (i32, i32) {
    %c0_i32 = arith.constant 0 : i32
    %c0_i32_0 = arith.constant 0 : i32
    return %arg0, %c0_i32 : i32, i32
  }
  func.func @transform_2(%arg0: i32) -> (i32, i32) {
    %c0_i32 = arith.constant 0 : i32
    %c0_i32_0 = arith.constant 0 : i32
    return %arg0, %c0_i32 : i32, i32
  }
}

</mosaic_0001>

<bundles_post_ra>
// kernel: tpu_custom_call.1
= control target key start
LH: loop header
LB: loop body
LE: loop exit
PB: predicated region body
PF: predicated region fallthrough
CT: control target
= control target key end

     0   :  { %7 = vsyncpa [#allocation5], 0  ;;  %s192_s0 = inlined_call_operand.hbm [shape: f32[4], index: 0, kind: input, shape index: {}]   ;;  %s193_s1 = inlined_call_operand.hbm [shape: f32[6,512], index: 1, kind: input, shape index: {}]   ;;  %s194_s2 = inlined_call_operand.hbm [shape: f32[6,512], index: 2, kind: output, shape index: {}]  }
   0x1   :  { %8 = vsyncpa [#allocation3], 0 }
   0x2   :  { %9 = vsyncpa [#allocation4], 0  ;;  %s165_s9 = smov [#allocation2]   ;;  %s166_s12 = smov [#allocation6]  }
   0x3   :  { %17 = dma.hbm_to_smem %s192_s0, 16, %s165_s9, [#allocation5]  }
   0x4   :  { %s24_s13 = sshll.u32 %s166_s12, 4  ;;  %s25_s13 = int_to_ptr.vmem [resolvable:$true] %s24_s13 }
   0x5   :  { %s127_s14 = scalar_lea.vmem %s25_s13, 512  ;;  %p132_p1 = scmp.lt.s32.totalorder %s25_s13, %s25_s13 }
   0x6   :  { %p128_p0 = scmp.ne.s32.totalorder %s25_s13, %s127_s14  ;;  %p133_p2 = scmp.lt.s32.totalorder %s127_s14, %s127_s14 }
   0x8   :  { %p134_p3 = por %p133_p2, %p132_p1 }
   0xa   :  { %p135_p4 = pnand %p134_p3, %p128_p0 }
   0xc   :  { %138 = shalt.err (!%p135_p4)
}
   0xd   :  { %27 = dma.hbm_to_vmem [thread:$0]  %s193_s1, 512, %s25_s13, [#allocation3]  }
   0xe   :  { %159 = dma.done.wait [#allocation5], 16  }
   0xf   :  { %160 = vsyncadd [#allocation5], 4294967280 }
  0x10   :  { %161 = dma.done.wait [#allocation3], 512  }
  0x11   :  { %162 = vsyncadd [#allocation3], 4294966784 }
  0x12   :  { %34 = sfence }
  0x13   :  { %v39_v0 = vld [vmem:[#allocation6] sm:$0xff]  ;;  %v40_v1 = vld [vmem:[#allocation6 + $0x8] sm:$0xff]  ;;  %v41_v2 = vld [vmem:[#allocation6 + $0x10] sm:$0xff]  ;;  %s106_s0 = sld [smem:[#allocation2 + $0x2]]  ;;  %s167_s19 = smov [#allocation7]  }
  0x14   :  { %v43_v3 = vadd.f32 %v40_v1, %v39_v0  ;;  %v42_v4 = vld [vmem:[#allocation6 + $0x18] sm:$0xff]  ;;  %s107_s17 = sld [smem:[#allocation2 + $0x3]]  ;;  %s95_s20 = sshll.u32 %s167_s19, 4  ;;  %s96_s20 = int_to_ptr.vmem [resolvable:$true] %s95_s20 }
  0x15   :  { %s35_s18 = sld [smem:[#allocation2]]  ;;  %s139_s21 = scalar_lea.vmem %s96_s20, 512 }
  0x16   :  { %v44_v5 = vadd.f32 %v43_v3, %v41_v2  ;;  %s105_s1 = sld [smem:[#allocation2 + $0x1]]  ;;  %p140_p5 = scmp.ne.s32.totalorder %s96_s20, %s139_s21 }
  0x17   :  { %p144_p6 = scmp.lt.s32.totalorder %s96_s20, %s96_s20  ;;  %p145_p7 = scmp.lt.s32.totalorder %s139_s21, %s139_s21 }
  0x18   :  { %v45_v6 = vadd.f32 %v44_v5, %v42_v4 }
  0x19   :  { %v48_v7 = vstv %s106_s0  ;;  %p146_p8 = por %p145_p7, %p144_p6 }
  0x1a   :  { %46 = vadd.xlane.f32.xlu0 %v45_v6  ;;  %v53_v8 = vstv %s107_s17  ;;  %v49_v9 = vmul.f32 %v48_v7, %v39_v0  ;;  %v50_v10 = vmul.f32 %v48_v7, %v40_v1  ;;  %v51_v11 = vmul.f32 %v48_v7, %v41_v2 }
  0x1b   :  { %v52_v12 = vmul.f32 %v48_v7, %v42_v4  ;;  %v67_v23 = vstv %s35_s18  ;;  %p147_p9 = pnand %p146_p8, %p140_p5 }
  0x1c   :  { %v72_v28 = vstv %s105_s1 }
  0xa3   :  { %v47_v13 = vpop.xlane.xlu0 %46 }
  0xa4   :  { %v54_v14 = vmul.f32 %v53_v8, %v47_v13 }
  0xa6   :  { %v55_v15 = vadd.f32 %v54_v14, %v49_v9  ;;  %v56_v16 = vadd.f32 %v54_v14, %v50_v10  ;;  %v57_v17 = vadd.f32 %v54_v14, %v51_v11  ;;  %v58_v18 = vadd.f32 %v54_v14, %v52_v12 }
  0xa8   :  { %v59_v19 = vmax.f32 %v55_v15, 0.0  ;;  %v60_v20 = vmax.f32 %v56_v16, 0.0  ;;  %v61_v21 = vmax.f32 %v57_v17, 0.0  ;;  %v62_v22 = vmax.f32 %v58_v18, 0.0 }
  0xaa   :  { %v63_v24 = vmin.f32 %v59_v19, 255.0  ;;  %v64_v25 = vmin.f32 %v60_v20, 255.0  ;;  %v65_v26 = vmin.f32 %v61_v21, 255.0  ;;  %v66_v27 = vmin.f32 %v62_v22, 255.0 }
  0xac   :  { %v68_v29 = vmul.f32 %v67_v23, %v63_v24  ;;  %v69_v30 = vmul.f32 %v67_v23, %v64_v25  ;;  %v70_v31 = vmul.f32 %v67_v23, %v65_v26  ;;  %v71_v32 = vmul.f32 %v67_v23, %v66_v27 }
  0xae   :  { %v73_v33 = vadd.f32 %v72_v28, %v68_v29  ;;  %v74_v34 = vadd.f32 %v72_v28, %v69_v30  ;;  %v75_v35 = vadd.f32 %v72_v28, %v70_v31  ;;  %v76_v36 = vadd.f32 %v72_v28, %v71_v32 }
  0xb0   :  { %v77_v37 = vmax.f32 %v73_v33, 0.0  ;;  %v78_v38 = vmax.f32 %v74_v34, 0.0  ;;  %v79_v39 = vmax.f32 %v75_v35, 0.0  ;;  %v80_v40 = vmax.f32 %v76_v36, 0.0 }
  0xb2   :  { %v81_v41 = vmin.f32 %v77_v37, 255.0  ;;  %v82_v42 = vmin.f32 %v78_v38, 255.0  ;;  %v83_v43 = vmin.f32 %v79_v39, 255.0  ;;  %v84_v44 = vmin.f32 %v80_v40, 255.0 }
  0xb4   :  { %85 = vst [vmem:[#allocation7] sm:$0xff] %v81_v41  ;;  %86 = vst [vmem:[#allocation7 + $0x8] sm:$0xff] %v82_v42 }
  0xb5   :  { %87 = vst [vmem:[#allocation7 + $0x10] sm:$0xff] %v83_v43  ;;  %88 = vst [vmem:[#allocation7 + $0x18] sm:$0xff] %v84_v44 }
  0xb6   :  { %150 = shalt.err (!%p147_p9)
}
  0xb7   :  { %98 = dma.vmem_to_hbm [thread:$0]  %s96_s20, 512, %s194_s2, [#allocation4]  }
  0xb8   :  { %163 = dma.done.wait [#allocation4], 512  }
  0xb9   :  { %164 = vsyncadd [#allocation4], 4294966784 }
  0xba   :  { %102 = vsyncpa [#allocation3], 1 }
  0xbb   :  { %103 = vsyncpa [#allocation4], 1 }
  0xbc   :  { %104 = vsyncpa [#allocation5], 1 }

</bundles_post_ra>
